<compile_context>
chip_gen: v7x
topology: tpu7x:2x2x1
jax: 0.10.0
libtpu: 0.0.40
codegen_flags: <defaults>
</compile_context>

<pallas_src>
import functools

import jax
import jax.numpy as jnp
import numpy as np
from jax import lax
from jax.experimental import pallas as pl
from jax.experimental.pallas import tpu as pltpu


# ---------------------------------------------------------------------------
# Small helpers
# ---------------------------------------------------------------------------

def _cdiv(a, b):
    return -(-a // b)


def _round_up(x, m):
    return ((x + m - 1) // m) * m


def _round_down(x, m):
    return (x // m) * m


def _device_kind():
    try:
        return jax.devices()[0].device_kind.lower()
    except Exception:  # pragma: no cover - defensive
        return ""


def _is_v7x():
    return "v7" in _device_kind()


def _budgets():
    """(double-buffered input-block budget, vmem_limit cap) in bytes."""
    if _is_v7x():                    # 64 MiB VMEM per TensorCore
        return 20 << 20, 48 << 20
    return 40 << 20, 96 << 20        # v5e / v6e: 128 MiB physical


def _native_sublanes(dtype):
    # f32 -> 8, bf16 -> 16, int8 -> 32 sublanes per native tile
    return max(8, 32 // jnp.dtype(dtype).itemsize)


def _vmem_block_bytes(rows, lanes, dtype):
    it = jnp.dtype(dtype).itemsize
    return (_round_up(max(int(rows), 1), _native_sublanes(dtype))
            * _round_up(int(lanes), 128) * it)


_TARGET_STEP_BYTES = 4 << 20   # aim ~4 MiB of HBM traffic per grid step


def _pick_lane_tile(extent, hbm_per_col, vmem_per_col, budget, override=None):
    """Balanced lane tile: minimal padding, bounded VMEM, ~4 MiB per step."""
    if override is not None:
        tile_max = max(128, _round_down(int(override), 128))
    else:
        by_vmem = budget // max(vmem_per_col, 1)
        by_step = max(_TARGET_STEP_BYTES // max(hbm_per_col, 1), 8192)
        tile_max = max(128, _round_down(min(by_vmem, by_step), 128))
    if extent <= tile_max:
        return _round_up(extent, 128)
    n = _cdiv(extent, tile_max)
    return _round_up(_cdiv(extent, n), 128)


def _pick_row_tile(rows, hbm_per_row, vmem_per_row, budget, override=None):
    """Balanced sublane (row) tile for the (N, R, 128) sigmoid layout."""
    if override is not None:
        r_max = max(8, _round_down(max(int(override) // 128, 8), 8))
    else:
        by_vmem = budget // max(vmem_per_row, 1)
        by_step = max(_TARGET_STEP_BYTES // max(hbm_per_row, 1), 64)
        r_max = max(8, _round_down(min(by_vmem, by_step), 8))
    if rows <= r_max:
        return rows
    n = _cdiv(rows, r_max)
    return _round_up(_cdiv(rows, n), 8)


def _split(nblk, n_split):
    """Number of hw splits (extra 'parallel' axis, 2 TCs on v7x) and blocks/split."""
    if n_split is None:
        n_split = 2 if _is_v7x() else 1
    n_split = max(1, min(int(n_split), nblk))
    return n_split, _cdiv(nblk, n_split)


def _vmem_limit(resident, cap):
    return int(min(cap, max(32 << 20, resident + (8 << 20))))


# ---------------------------------------------------------------------------
# Kernels: each accumulates per-(split, batch) partial sums directly into
# lane-dense (1,1,1,128) output blocks that stay resident across the hw axis.
# ---------------------------------------------------------------------------

def _softmax_sums_kernel(x_ref, t_ref, inter_ref, tsum_ref, *, hw, tile, bps):
    s = pl.program_id(0)
    h = pl.program_id(2)

    @pl.when(h == 0)
    def _():
        inter_ref[...] = jnp.zeros_like(inter_ref)
        tsum_ref[...] = jnp.zeros_like(tsum_ref)

    base = (s * bps + h) * tile
    col = base + lax.broadcasted_iota(jnp.int32, (1, 1, tile), 2)
    valid = col < hw                                   # ragged tail / overshoot

    x = jnp.where(valid, x_ref[...].astype(jnp.float32), 0.0)   # (1, C, tile)
    t = jnp.where(valid, t_ref[...].astype(jnp.float32), 0.0)   # (1, C, tile)

    m = jnp.max(x, axis=1, keepdims=True)
    e = jnp.exp(x - m)
    den = jnp.sum(e, axis=1, keepdims=True)            # masked lanes: den = C
    num = jnp.sum(e * t, axis=1, keepdims=True)        # masked lanes: num = 0

    inter_ref[...] = inter_ref[...] + jnp.sum(num / den)
    tsum_ref[...] = tsum_ref[...] + jnp.sum(t)


def _sigmoid_sums_kernel(x_ref, t_ref, inter_ref, psum_ref, tsum_ref, *,
                         limit, span, bps, mask_axis):
    s = pl.program_id(0)
    h = pl.program_id(2)

    @pl.when(h == 0)
    def _():
        inter_ref[...] = jnp.zeros_like(inter_ref)
        psum_ref[...] = jnp.zeros_like(psum_ref)
        tsum_ref[...] = jnp.zeros_like(tsum_ref)

    base = (s * bps + h) * span
    if mask_axis == 1:                       # rows layout: mask sublanes
        mshape = (1, span, 128)
    else:                                    # channel layout: mask lanes
        mshape = (1, 1, span)
    idx = base + lax.broadcasted_iota(jnp.int32, mshape, mask_axis)
    valid = idx < limit

    p = jnp.where(valid, jax.nn.sigmoid(x_ref[...].astype(jnp.float32)), 0.0)
    t = jnp.where(valid, t_ref[...].astype(jnp.float32), 0.0)

    inter_ref[...] = inter_ref[...] + jnp.sum(p * t)   # t broadcasts over C
    psum_ref[...] = psum_ref[...] + jnp.sum(p)
    tsum_ref[...] = tsum_ref[...] + jnp.sum(t)


def _sum_kernel(t_ref, tsum_ref, *, limit, tile, bps):
    # Ct==1 softmax shortcut: only sum(targets) is needed (logits never read).
    s = pl.program_id(0)
    h = pl.program_id(2)

    @pl.when(h == 0)
    def _():
        tsum_ref[...] = jnp.zeros_like(tsum_ref)

    base = (s * bps + h) * tile
    col = base + lax.broadcasted_iota(jnp.int32, (1, 1, tile), 2)
    t = jnp.where(col < limit, t_ref[...].astype(jnp.float32), 0.0)
    tsum_ref[...] = tsum_ref[...] + jnp.sum(t)


# ---------------------------------------------------------------------------
# pallas_call wrappers (return per-batch partial sums; final ratio in JAX)
# ---------------------------------------------------------------------------

def _softmax_sums(inputs, targets, tile_hw, n_split):
    """Per-batch (intersection, sum_targets) for softmax with Ct == C."""
    N, C, H, W = inputs.shape
    HW = H * W
    x = inputs.reshape(N, C, HW)          # free reshape, native dtype
    t = targets.reshape(N, C, HW)
    xi = jnp.dtype(x.dtype).itemsize
    ti = jnp.dtype(t.dtype).itemsize

    tile_budget, vmem_cap = _budgets()
    hbm_per_col = C * (xi + ti)
    vmem_per_col = 2 * (_round_up(C, _native_sublanes(x.dtype)) * xi
                        + _round_up(C, _native_sublanes(t.dtype)) * ti)
    tile = _pick_lane_tile(HW, hbm_per_col, vmem_per_col, tile_budget, tile_hw)
    nblk = _cdiv(HW, tile)
    S, bps = _split(nblk, n_split)

    resident = (2 * _vmem_block_bytes(C, tile, x.dtype)
                + 2 * _vmem_block_bytes(C, tile, t.dtype)
                + 4 * 8 * 128 * 4)

    in_map = lambda s, b, h: (b, 0, jnp.minimum(s * bps + h, nblk - 1))
    out_map = lambda s, b, h: (s, b, 0, 0)

    inter, tsum = pl.pallas_call(
        functools.partial(_softmax_sums_kernel, hw=HW, tile=tile, bps=bps),
        out_shape=(jax.ShapeDtypeStruct((S, N, 1, 128), jnp.float32),
                   jax.ShapeDtypeStruct((S, N, 1, 128), jnp.float32)),
        grid_spec=pltpu.PrefetchScalarGridSpec(
            num_scalar_prefetch=0,
            grid=(S, N, bps),
            in_specs=[pl.BlockSpec((1, C, tile), in_map),
                      pl.BlockSpec((1, C, tile), in_map)],
            out_specs=[pl.BlockSpec((1, 1, 1, 128), out_map),
                       pl.BlockSpec((1, 1, 1, 128), out_map)],
        ),
        compiler_params=pltpu.CompilerParams(
            dimension_semantics=("parallel", "parallel", "arbitrary"),
            vmem_limit_bytes=_vmem_limit(resident, vmem_cap),
        ),
        cost_estimate=pl.CostEstimate(
            flops=int(10 * N * C * HW),
            transcendentals=int(N * C * HW),
            bytes_accessed=int(x.nbytes + t.nbytes + 2 * S * N * 512),
        ),
    )(x, t)
    return inter[:, :, 0, 0].sum(axis=0), tsum[:, :, 0, 0].sum(axis=0)


def _target_sums(targets, tile_hw, n_split):
    """Per-batch sum(targets) for the logits-free Ct==1 softmax shortcut."""
    N, _, H, W = targets.shape
    HW = H * W
    t = targets.reshape(N, 1, HW)
    ti = jnp.dtype(t.dtype).itemsize

    tile_budget, vmem_cap = _budgets()
    vmem_per_col = 2 * _native_sublanes(t.dtype) * ti
    tile = _pick_lane_tile(HW, ti, vmem_per_col, tile_budget, tile_hw)
    nblk = _cdiv(HW, tile)
    S, bps = _split(nblk, n_split)

    resident = 2 * _vmem_block_bytes(1, tile, t.dtype) + 2 * 8 * 128 * 4

    in_map = lambda s, b, h: (b, 0, jnp.minimum(s * bps + h, nblk - 1))
    out_map = lambda s, b, h: (s, b, 0, 0)

    out = pl.pallas_call(
        functools.partial(_sum_kernel, limit=HW, tile=tile, bps=bps),
        out_shape=jax.ShapeDtypeStruct((S, N, 1, 128), jnp.float32),
        grid_spec=pltpu.PrefetchScalarGridSpec(
            num_scalar_prefetch=0,
            grid=(S, N, bps),
            in_specs=[pl.BlockSpec((1, 1, tile), in_map)],
            out_specs=pl.BlockSpec((1, 1, 1, 128), out_map),
        ),
        compiler_params=pltpu.CompilerParams(
            dimension_semantics=("parallel", "parallel", "arbitrary"),
            vmem_limit_bytes=_vmem_limit(resident, vmem_cap),
        ),
        cost_estimate=pl.CostEstimate(
            flops=int(2 * N * HW),
            transcendentals=0,
            bytes_accessed=int(t.nbytes + S * N * 512),
        ),
    )(t)
    return out[:, :, 0, 0].sum(axis=0)


def _sigmoid_sums(inputs, targets, tile_hw, n_split):
    """Per-batch (intersection, sum_probs, sum_targets) for the sigmoid path."""
    N, C, H, W = inputs.shape
    Ct = targets.shape[1]
    HW = H * W
    x = inputs if jnp.issubdtype(inputs.dtype, jnp.floating) else inputs.astype(jnp.float32)
    xi = jnp.dtype(x.dtype).itemsize
    ti = jnp.dtype(targets.dtype).itemsize
    tile_budget, vmem_cap = _budgets()

    rows_layout = (Ct == C) and ((C * HW) % 128 == 0)   # free reshape, full sublanes
    if rows_layout:
        R = (C * HW) // 128
        xv = x.reshape(N, R, 128)
        tv = targets.reshape(N, R, 128)
        hbm_per_row = 128 * (xi + ti)
        vmem_per_row = 2 * hbm_per_row
        r_tile = _pick_row_tile(R, hbm_per_row, vmem_per_row, tile_budget, tile_hw)
        nblk = _cdiv(R, r_tile)
        S, bps = _split(nblk, n_split)
        in_map = lambda s, b, h: (b, jnp.minimum(s * bps + h, nblk - 1), 0)
        x_block = (1, r_tile, 128)
        t_block = (1, r_tile, 128)
        kernel = functools.partial(_sigmoid_sums_kernel, limit=R, span=r_tile,
                                   bps=bps, mask_axis=1)
        resident = (2 * _vmem_block_bytes(r_tile, 128, x.dtype)
                    + 2 * _vmem_block_bytes(r_tile, 128, targets.dtype)
                    + 6 * 8 * 128 * 4)
        elems = N * R * 128
    else:
        xv = x.reshape(N, C, HW)
        tv = targets.reshape(N, Ct, HW)
        hbm_per_col = C * xi + Ct * ti
        vmem_per_col = 2 * (_round_up(C, _native_sublanes(x.dtype)) * xi
                            + _round_up(Ct, _native_sublanes(targets.dtype)) * ti)
        tile = _pick_lane_tile(HW, hbm_per_col, vmem_per_col, tile_budget, tile_hw)
        nblk = _cdiv(HW, tile)
        S, bps = _split(nblk, n_split)
        in_map = lambda s, b, h: (b, 0, jnp.minimum(s * bps + h, nblk - 1))
        x_block = (1, C, tile)
        t_block = (1, Ct, tile)
        kernel = functools.partial(_sigmoid_sums_kernel, limit=HW, span=tile,
                                   bps=bps, mask_axis=2)
        resident = (2 * _vmem_block_bytes(C, tile, x.dtype)
                    + 2 * _vmem_block_bytes(Ct, tile, targets.dtype)
                    + 6 * 8 * 128 * 4)
        elems = N * C * HW

    out_map = lambda s, b, h: (s, b, 0, 0)
    inter, psum, tsum = pl.pallas_call(
        kernel,
        out_shape=(jax.ShapeDtypeStruct((S, N, 1, 128), jnp.float32),) * 3,
        grid_spec=pltpu.PrefetchScalarGridSpec(
            num_scalar_prefetch=0,
            grid=(S, N, bps),
            in_specs=[pl.BlockSpec(x_block, in_map),
                      pl.BlockSpec(t_block, in_map)],
            out_specs=[pl.BlockSpec((1, 1, 1, 128), out_map)] * 3,
        ),
        compiler_params=pltpu.CompilerParams(
            dimension_semantics=("parallel", "parallel", "arbitrary"),
            vmem_limit_bytes=_vmem_limit(resident, vmem_cap),
        ),
        cost_estimate=pl.CostEstimate(
            flops=int(8 * elems),
            transcendentals=int(elems),
            bytes_accessed=int(xv.nbytes + tv.nbytes + 3 * S * N * 512),
        ),
    )(xv, tv)
    return (inter[:, :, 0, 0].sum(axis=0),
            psum[:, :, 0, 0].sum(axis=0),
            tsum[:, :, 0, 0].sum(axis=0))


# ---------------------------------------------------------------------------
# Public entry point
# ---------------------------------------------------------------------------

def jaccard_loss(inputs, targets, *, num_classes, smooth=1.0,
                 tile_hw=None, n_split=None):
    """Pallas equivalent of JaccardLoss.forward.

    inputs:  (N, C, H, W) float logits (any float dtype; cast in-kernel)
    targets: (N, H, W), (N, 1, H, W) or (N, C, H, W)
    returns: scalar f32 loss
    """
    N, C, H, W = inputs.shape
    if targets.ndim == 3:
        targets = targets[:, None, :, :]
    if targets.dtype == jnp.bool_:
        targets = targets.astype(jnp.int8)
    Ct = targets.shape[1]
    if Ct not in (1, C):
        raise ValueError(f"targets must have 1 or {C} channels, got {Ct}")
    HW = H * W

    if num_classes == 1:                        # sigmoid path
        inter, psum, tsum = _sigmoid_sums(inputs, targets, tile_hw, n_split)
        tsum = tsum * float(C // Ct)            # reference repeats 1-channel masks
    elif Ct == 1:
        # Softmax path with single-channel mask: sum_c softmax(x)_c == 1 per
        # pixel, so intersection == sum(t); logits never leave HBM.
        st = _target_sums(targets, tile_hw, n_split)
        inter = st
        tsum = float(C) * st
        psum = jnp.full((N,), float(HW), dtype=jnp.float32)
    else:                                       # softmax path, full C-channel target
        inter, tsum = _softmax_sums(inputs, targets, tile_hw, n_split)
        psum = jnp.full((N,), float(HW), dtype=jnp.float32)

    # Final per-batch ratio + mean over N scalars: plain JAX (negligible work).
    union = psum + tsum - inter
    jac = (inter + smooth) / (union + smooth)
    return 1.0 - jnp.mean(jac)


# ---------------------------------------------------------------------------
# Pure-JAX reference mirroring the PyTorch forward exactly
# ---------------------------------------------------------------------------

def _reference_jaccard_loss(inputs, targets, *, num_classes, smooth=1.0):
    inputs = inputs.astype(jnp.float32)
    targets = targets.astype(jnp.float32)
    if targets.ndim == 3:
        targets = targets[:, None, :, :]
    if targets.shape[1] == 1:
        targets = jnp.tile(targets, (1, inputs.shape[1], 1, 1))
    if num_classes == 1:
        probs = jax.nn.sigmoid(inputs)
    else:
        probs = jax.nn.softmax(inputs, axis=1)
    intersection = jnp.sum(probs * targets, axis=(1, 2, 3))
    union = (jnp.sum(probs, axis=(1, 2, 3)) + jnp.sum(targets, axis=(1, 2, 3))
             - intersection)
    jaccard = (intersection + smooth) / (union + smooth)
    return 1.0 - jnp.mean(jaccard)


if __name__ == "__main__":
    key = jax.random.PRNGKey(0)
    ks = jax.random.split(key, 16)

    def check(name, inputs, targets, num_classes, tile_hw=None, n_split=None,
              smooth=1.0):
        got = jax.block_until_ready(
            jaccard_loss(inputs, targets, num_classes=num_classes,
                         smooth=smooth, tile_hw=tile_hw, n_split=n_split))
        want = jax.block_until_ready(
            _reference_jaccard_loss(inputs, targets, num_classes=num_classes,
                                    smooth=smooth))
        assert np.allclose(np.asarray(got), np.asarray(want),
                           rtol=1e-5, atol=1e-5), (name, float(got), float(want))

    # 1) softmax, single-channel mask -> logits-free shortcut (target-sum kernel)
    x1 = jax.random.normal(ks[0], (2, 4, 16, 16), dtype=jnp.float32)
    t1 = jax.random.bernoulli(ks[1], 0.5, (2, 16, 16)).astype(jnp.float32)
    check("softmax_single_channel_shortcut", x1, t1, 4)

    # 2) softmax, full multi-channel target, forced 2-way hw tiling
    t2 = jax.random.bernoulli(ks[2], 0.5, (2, 4, 16, 16)).astype(jnp.float32)
    check("softmax_multichannel_tiled", x1, t2, 4, tile_hw=128)

    # 3) softmax, multi-channel, ragged H*W (in-kernel lane mask) + hw split
    x3 = jax.random.normal(ks[3], (2, 3, 13, 13), dtype=jnp.float32)
    t3 = jax.random.bernoulli(ks[4], 0.5, (2, 3, 13, 13)).astype(jnp.float32)
    check("softmax_multichannel_ragged", x3, t3, 3, tile_hw=128, n_split=2)

    # 4) softmax shortcut with ragged H*W (masked target-sum kernel)
    t4 = jax.random.bernoulli(ks[5], 0.5, (2, 13, 13)).astype(jnp.float32)
    check("softmax_shortcut_ragged", x3, t4, 3, tile_hw=128)

    # 5) sigmoid, C==1, HW divisible by 128 -> rows layout, single tile
    x5 = jax.random.normal(ks[6], (2, 1, 16, 16), dtype=jnp.float32)
    t5 = jax.random.bernoulli(ks[7], 0.5, (2, 16, 16)).astype(jnp.float32)
    check("sigmoid_rows_single_tile", x5, t5, 1)

    # 6) sigmoid rows layout, multi-tile, ragged rows + clamped overshoot block
    x6 = jax.random.normal(ks[8], (2, 1, 40, 64), dtype=jnp.float32)
    t6 = jax.random.bernoulli(ks[9], 0.5, (2, 40, 64)).astype(jnp.float32)
    check("sigmoid_rows_ragged_split", x6, t6, 1, tile_hw=1024, n_split=2)

    # 7) sigmoid, HW not divisible by 128 -> channel layout with lane masking
    x7 = jax.random.normal(ks[10], (2, 1, 40, 40), dtype=jnp.float32)
    t7 = jax.random.bernoulli(ks[11], 0.5, (2, 40, 40)).astype(jnp.float32)
    check("sigmoid_channel_ragged", x7, t7, 1, tile_hw=1024)

    # 8) sigmoid, C=2 with single-channel mask broadcast inside the kernel
    x8 = jax.random.normal(ks[12], (2, 2, 13, 13), dtype=jnp.float32)
    t8 = jax.random.bernoulli(ks[13], 0.5, (2, 13, 13)).astype(jnp.float32)
    check("sigmoid_broadcast_target", x8, t8, 1, tile_hw=128)

    print("KERNEL_OK")
</pallas_src>

<mosaic_0001>
module attributes {stable_mosaic.version = 11 : i64} {
  func.func @_sum_kernel(%arg0: i32, %arg1: i32, %arg2: i32, %arg3: memref<1x1x256xf32, #tpu.memory_space<vmem>>, %arg4: memref<1x1x1x128xf32, #tpu.memory_space<vmem>>) attributes {dimension_semantics = [#tpu.dimension_semantics<parallel>, #tpu.dimension_semantics<parallel>, #tpu.dimension_semantics<arbitrary>], iteration_bounds = array<i64: 1, 2, 1>, scalar_prefetch = 0 : i64, scratch_operands = 0 : i64, tpu.core_type = #tpu.core_type<tc>, window_params = [{transform_indices = @transform_0, window_bounds = array<i64: 1, 1, 256>}, {transform_indices = @transform_1, window_bounds = array<i64: 1, 1, 1, 128>}]} {
    %c0_i32 = arith.constant 0 : i32
    %0 = arith.cmpi eq, %arg2, %c0_i32 : i32
    %1 = arith.extui %0 : i1 to i32
    %c0_i32_0 = arith.constant 0 : i32
    %2 = arith.cmpi ne, %1, %c0_i32_0 : i32
    scf.if %2 {
      %cst_13 = arith.constant 0.000000e+00 : f32
      %22 = vector.broadcast %cst_13 : f32 to vector<1x1x1x128xf32>
      %c0_14 = arith.constant 0 : index
      %c0_15 = arith.constant 0 : index
      %c0_16 = arith.constant 0 : index
      %c0_17 = arith.constant 0 : index
      %23 = vector.load %arg4[%c0_14, %c0_15, %c0_16, %c0_17] : memref<1x1x1x128xf32, #tpu.memory_space<vmem>>, vector<1x1x1x128xf32>
      tpu.vector_store %arg4[%c0_14, %c0_15, %c0_16, %c0_17], %22 {strides = array<i32>} : memref<1x1x1x128xf32, #tpu.memory_space<vmem>>, vector<1x1x1x128xf32>,
    } else {
    }
    %c1_i32 = arith.constant 1 : i32
    %3 = arith.muli %arg0, %c1_i32 : i32
    %4 = arith.addi %3, %arg2 : i32
    %c256_i32 = arith.constant 256 : i32
    %5 = arith.muli %4, %c256_i32 : i32
    %6 = tpu.iota {dimensions = array<i32: 2>} : vector<1x1x256xi32>
    %7 = vector.broadcast %5 : i32 to vector<1x1x256xi32>
    %8 = arith.addi %7, %6 : vector<1x1x256xi32>
    %c256_i32_1 = arith.constant 256 : i32
    %9 = vector.broadcast %c256_i32_1 : i32 to vector<1x1x256xi32>
    %10 = arith.cmpi slt, %8, %9 : vector<1x1x256xi32>
    %c0 = arith.constant 0 : index
    %c0_2 = arith.constant 0 : index
    %c0_3 = arith.constant 0 : index
    %11 = vector.load %arg3[%c0, %c0_2, %c0_3] : memref<1x1x256xf32, #tpu.memory_space<vmem>>, vector<1x1x256xf32>
    %cst = arith.constant 0.000000e+00 : f32
    %12 = vector.broadcast %cst : f32 to vector<1x1x256xf32>
    %13 = arith.select %10, %11, %12 : vector<1x1x256xi1>, vector<1x1x256xf32>
    %c0_4 = arith.constant 0 : index
    %c0_5 = arith.constant 0 : index
    %c0_6 = arith.constant 0 : index
    %c0_7 = arith.constant 0 : index
    %14 = vector.load %arg4[%c0_4, %c0_5, %c0_6, %c0_7] : memref<1x1x1x128xf32, #tpu.memory_space<vmem>>, vector<1x1x1x128xf32>
    %15 = vector.shape_cast %13 : vector<1x1x256xf32> to vector<1x1x1x256xf32>
    %cst_8 = arith.constant dense<0.000000e+00> : vector<1xf32>
    %16 = vector.multi_reduction <add>, %15, %cst_8 [1, 2, 3] : vector<1x1x1x256xf32> to vector<1xf32>
    %17 = vector.shape_cast %16 : vector<1xf32> to vector<1x1x1x1xf32>
    %18 = vector.extract %17[0, 0, 0, 0] : f32 from vector<1x1x1x1xf32>
    %19 = vector.broadcast %18 : f32 to vector<1x1x1x128xf32>
    %20 = arith.addf %14, %19 : vector<1x1x1x128xf32>
    %c0_9 = arith.constant 0 : index
    %c0_10 = arith.constant 0 : index
    %c0_11 = arith.constant 0 : index
    %c0_12 = arith.constant 0 : index
    %21 = vector.load %arg4[%c0_9, %c0_10, %c0_11, %c0_12] : memref<1x1x1x128xf32, #tpu.memory_space<vmem>>, vector<1x1x1x128xf32>
    tpu.vector_store %arg4[%c0_9, %c0_10, %c0_11, %c0_12], %20 {strides = array<i32>} : memref<1x1x1x128xf32, #tpu.memory_space<vmem>>, vector<1x1x1x128xf32>,
    return
  }
  func.func @transform_0(%arg0: i32, %arg1: i32, %arg2: i32) -> (i32, i32, i32) {
    %c1_i32 = arith.constant 1 : i32
    %0 = arith.muli %arg0, %c1_i32 : i32
    %1 = arith.addi %0, %arg2 : i32
    %c0_i32 = arith.constant 0 : i32
    %2 = arith.minsi %1, %c0_i32 : i32
    %c0_i32_0 = arith.constant 0 : i32
    %c0_i32_1 = arith.constant 0 : i32
    return %arg1, %c0_i32_0, %2 : i32, i32, i32
  }
  func.func @transform_1(%arg0: i32, %arg1: i32, %arg2: i32) -> (i32, i32, i32, i32) {
    %c0_i32 = arith.constant 0 : i32
    %c0_i32_0 = arith.constant 0 : i32
    %c0_i32_1 = arith.constant 0 : i32
    return %arg0, %arg1, %c0_i32, %c0_i32_0 : i32, i32, i32, i32
  }
}

</mosaic_0001>

<bundles_post_ra>
// kernel: tpu_custom_call.1
= control target key start
LH: loop header
LB: loop body
LE: loop exit
PB: predicated region body
PF: predicated region fallthrough
CT: control target
= control target key end

     0   :  { %6 = vsyncpa [#allocation3], 0  ;;  %s697_s0 = inlined_call_operand.hbm [shape: f32[2,1,256], index: 0, kind: input, shape index: {}]   ;;  %s698_s1 = inlined_call_operand.hbm [shape: f32[1,2,1,128], index: 1, kind: output, shape index: {}]  }
   0x1   :  { %8 = vsyncpa [#allocation3 + $0x1], 0 }
   0x2   :  { %9 = vsyncpa [#allocation4], 0 }
   0x3   :  { %11 = vsyncpa [#allocation4 + $0x1], 0  ;;  %s518_s6 = smov 0   ;;  %s520_s7 = smov 0  }
   0x4   :  { %s522_s8 = smov 0   ;;  %s524_s9 = smov 0  }
   0x5   :  { %s526_s10 = smov 0   ;;  %s528_s11 = smov 0  }
   0x6 LB: > { %s313_s12 = sadd.s32 4294967295, %s503_s11   ;;  %s314_s13 = sadd.s32 4294967294, %s503_s11   ;;  %s503_s11 = sphi %s528_s11, %s17_s11   ;;  %s499_s10 = sphi %s526_s10, %s714_s10   ;;  %s495_s9 = sphi %s524_s9, %s713_s9   ;;  %s491_s8 = sphi %s522_s8, %s712_s8   ;;  %s487_s7 = sphi %s520_s7, %s711_s7   ;;  %s483_s6 = sphi %s518_s6, %s710_s6  }
   0x7   : > { %s32_s14 = sadd.s32 1, %s499_s10  ;;  %s51_s15 = sadd.s32 1, %s491_s8 }
   0x8   : > { %p34_p0 = scmp.ge.s32.totalorder %s32_s14, 2  ;;  %p58_p1 = scmp.ne.s32.totalorder %s491_s8, %s487_s7 }
   0x9   : > { %p59_p2 = scmp.eq.s32.totalorder %s503_s11, 0  ;;  %p64_p3 = scmp.ne.s32.totalorder %s487_s7, %s483_s6 }
   0xa   : > { %s716_s14 = smov (%p34_p0, %s32_s14), 0  ;;  %p65_p5 = scmp.eq.s32.totalorder %s313_s12, 0 }
   0xb   : > { %p559_p4 = por %p59_p2, %p58_p1  ;;  %s46_s17 = ssub.s32 %s499_s10, %s716_s14 }
   0xc   : > { %p90_p6 = scmp.eq.s32.totalorder %s313_s12, 1  ;;  %p49_p7 = scmp.eq.s32.totalorder %s46_s17, 0 }
   0xd   : > { %p565_p8 = por %p65_p5, %p64_p3  ;;  %p96_p10 = scmp.eq.s32.totalorder %s314_s13, 1 }
   0xe   : > { %p569_p9 = por %p90_p6, %p58_p1  ;;  %p340_p13 = scmp.lt.s32.totalorder %s503_s11, 2 }
   0xf   : > { %s574_s20 = scalar_select %p49_p7, %s491_s8, %s51_s15  }
  0x10   : > { %s702_s19 = scalar_select %p569_p9, 1, 0 }
  0x11   : > { %p576_p11 = por %p96_p10, %p64_p3  ;;  %s116_s22 = sand.u32 1, %s491_s8  }
  0x12   : > { %s317_s23 = sshll.u32 %s116_s22, 1  ;;  %s325_s24 = sshll.u32 %s499_s10, 5 }
  0x13   : > { %s703_s21 = scalar_select %p576_p11, 1, 0 }
  0x14   : > { %s587_s27 = scalar_lea.hbm %s697_s0, %s325_s24  ;;  %s120_s28 = scalar_lea.vmem [#allocation2], %s317_s23 }
  0x15   : > { %s133_s29 = sshll.u32 %s120_s28, 4  ;;  %p593_p0 = pnand %p340_p13, %p559_p4  ;;  %s589_s29 = int_to_ptr.vmem [resolvable:$true] %s133_s29 }
  0x16   : > { %s117_s2 = scalar_lea.sflag [#allocation3], %s116_s22  ;;  %s391_s3 = scalar_lea.hbm %s587_s27, 32 }
  0x17   : > { %p392_p3 = scmp.ne.s32.totalorder %s587_s27, %s391_s3  ;;  %p393_p5 = pneg %p593_p0 }
  0x18   : > { %s396_s12 = scalar_lea.hbm %s697_s0, 64  ;;  %p397_p4 = scmp.lt.u32.totalorder %s587_s27, %s697_s0 }
  0x19   : > { %p394_p6 = pnand %p393_p5, %p392_p3  ;;  %p398_p10 = scmp.lt.u32.totalorder %s396_s12, %s391_s3 }
  0x1a   : > { %p400_p12 = scmp.lt.u32.totalorder %s391_s3, %s587_s27 }
  0x1b   : > { %p395_p7 = pneg %p394_p6  ;;  %p399_p13 = por %p398_p10, %p397_p4 }
  0x1d   : > { %p401_p1 = por %p400_p12, %p399_p13 }
  0x1f   : > { %p402_p2 = pnand %p401_p1, %p395_p7 }
  0x21   : > { %405 = shalt.err (!%p402_p2)
}
  0x22   : > { %s406_s16 = scalar_lea.vmem %s589_s29, 32  ;;  %s505_s17 = smov [#allocation2]  }
  0x23   : > { %p407_p3 = scmp.ne.s32.totalorder %s589_s29, %s406_s16  ;;  %s411_s22 = sshll.u32 %s505_s17, 4  ;;  %s412_s22 = int_to_ptr.vmem [resolvable:$false] %s411_s22 }
  0x24   : > { %s413_s23 = scalar_lea.vmem %s412_s22, 64  ;;  %p414_p9 = scmp.lt.s32.totalorder %s589_s29, %s412_s22 }
  0x25   : > { %p409_p6 = pnand %p407_p3, %p393_p5  ;;  %p415_p4 = scmp.lt.s32.totalorder %s413_s23, %s406_s16 }
  0x27   : > { %p410_p11 = pneg %p409_p6  ;;  %p416_p10 = por %p415_p4, %p414_p9 }
  0x29   : > { %p417_p12 = pnand %p416_p10, %p410_p11 }
  0x2b   : > { %420 = shalt.err (!%p417_p12)
}
  0x2c   : > { %335 = dma.hbm_to_vmem [thread:$0]  (!%p593_p0), %s587_s27, 32, %s589_s29, %s117_s2  }
  0x2d   : > { %p705_p1 = scmp.lt.s32.totalorder %s503_s11, 3  ;;  %p706_p2 = scmp.ge.s32.totalorder %s503_s11, 1 }
  0x2f   : > { %p139_p5 = pnand %p706_p2, %p705_p1 }
  0x30   : > { %s629_s24 = sand.u32 (!%p139_p5), 1, %s487_s7  }
  0x31   : > { %142 = sbr.rel (%p139_p5) target bundleno = 289 (0x121), region = 24  ;;  %s321_s25 = sshll.u32 (!%p139_p5), %s629_s24, 1 }
  0x32   : > { %s145_s26 = scalar_lea.sflag (!%p139_p5), [#allocation3], %s629_s24  ;;  %s148_s28 = scalar_lea.vmem (!%p139_p5), [#allocation2], %s321_s25 }
  0x38   : > { %474 = dma.done.wait (%p565_p8), %s145_s26, 32  }
  0x39   : > { %476 = vsyncadd (%p565_p8), %s145_s26, 4294967264  ;;  %v187_v0 = vlaneseq  ;;  %s638_s27 = scalar_lea.vmem [#allocation5], %s629_s24  ;;  %v506_v1 = vmov 0.0   ;;  %v185_v5 = vld [vmem:[%s148_s28] sm:$0x3]  ;;  %vm200_vm0 = vcmask 1040384  }
  0x3a   : > { %174 = vst [vmem:[%s638_s27] sm:$0x1] %v506_v1  ;;  %s322_s18 = sshll.u32 %s495_s9, 4  ;;  %s231_s29 = sshll.u32 %s638_s27, 4  ;;  %s649_s29 = int_to_ptr.vmem [resolvable:$true] %s231_s29 }
  0x3b   : > { %v188_v2 = vshrl.u32 %v187_v0, 7  ;;  %s647_s4 = scalar_lea.hbm %s698_s1, %s322_s18  ;;  %s217_s5 = scalar_lea.sflag [#allocation4], %s629_s24 }
  0x3c   : > { %s421_s12 = scalar_lea.vmem %s649_s29, 16  ;;  %p707_p9 = scmp.ne.s32.totalorder %s702_s19, 0 }
  0x3d   : > { %v189_v3 = vsub.s32 0, %v188_v2  ;;  %v193_v4 = vsub.s32 1, %v188_v2  ;;  %p422_p8 = scmp.ne.s32.totalorder %s649_s29, %s421_s12  ;;  %s507_s9 = smov [#allocation5]  }
  0x3e   : > { %s425_s13 = sshll.u32 %s507_s9, 4  ;;  %s426_s13 = int_to_ptr.vmem [resolvable:$false] %s425_s13 }
  0x3f   : > { %v190_v6 = vrot.slane %v185_v5, %v189_v3  ;;  %v194_v7 = vrot.slane %v185_v5, %v193_v4  ;;  %p423_p11 = pnand %p422_p8, %p707_p9  ;;  %s427_s15 = scalar_lea.vmem %s426_s13, 32 }
  0x40   : > { %p428_p7 = scmp.lt.s32.totalorder %s649_s29, %s426_s13  ;;  %p429_p13 = scmp.lt.s32.totalorder %s427_s15, %s421_s12 }
  0x41   : > { %v201_v8 = vsel %vm200_vm0, %v190_v6, 0.0  ;;  %v202_v9 = vsel %vm200_vm0, %v194_v7, 0.0  ;;  %v199_v18 = vld [vmem:[%s638_s27] sm:$0x1]  ;;  %p424_p0 = pneg %p423_p11 }
  0x42   : > { %v203_v10 = vadd.f32 %v202_v9, %v201_v8  ;;  %p430_p3 = por %p429_p13, %p428_p7 }
  0x44   : > { %204 = vadd.xlane.f32.xlu0 %v203_v10  ;;  %p431_p6 = pnand %p430_p3, %p424_p0 }
  0xd1   : > { %v205_v11 = vpop.xlane.xlu0 %204 }
  0xd2   : > { %v206_v12 = vrot.slane %v205_v11, 4 }
  0xd4   : > { %v207_v13 = vadd.f32 %v206_v12, %v205_v11 }
  0xd6   : > { %v208_v14 = vrot.slane %v207_v13, 2 }
  0xd8   : > { %v209_v15 = vadd.f32 %v208_v14, %v207_v13 }
  0xda   : > { %v210_v16 = vrot.slane %v209_v15, 1 }
  0xdc   : > { %v211_v17 = vadd.f32 %v210_v16, %v209_v15 }
  0xde   : > { %326 = vpush %v211_v17 }
 0x10f   : > { %s327_s30 = spop %326 }
 0x110   : > { %v213_v19 = vstv %s327_s30 }
 0x111   : > { %v214_v20 = vadd.f32 %v213_v19, %v199_v18 }
 0x113   : > { %215 = vst [vmem:[%s638_s27] sm:$0x1] %v214_v20 }
 0x114   : > { %434 = shalt.err (!%p431_p6)
}
 0x115   : > { %s435_s16 = scalar_lea.hbm %s647_s4, 16  ;;  %s439_s23 = scalar_lea.hbm %s698_s1, 32 }
 0x116   : > { %p436_p4 = scmp.ne.s32.totalorder %s647_s4, %s435_s16  ;;  %p440_p1 = scmp.lt.u32.totalorder %s647_s4, %s698_s1 }
 0x117   : > { %p441_p2 = scmp.lt.u32.totalorder %s439_s23, %s435_s16  ;;  %p443_p8 = scmp.lt.u32.totalorder %s435_s16, %s647_s4 }
 0x118   : > { %p437_p10 = pnand %p436_p4, %p707_p9 }
 0x119   : > { %p442_p5 = por %p441_p2, %p440_p1 }
 0x11a   : > { %p438_p12 = pneg %p437_p10 }
 0x11b   : > { %p444_p11 = por %p443_p8, %p442_p5 }
 0x11d   : > { %p445_p0 = pnand %p444_p11, %p438_p12 }
 0x11f   : > { %448 = shalt.err (!%p445_p0)
}
 0x120   : > { %330 = dma.vmem_to_hbm [thread:$0]  (%p707_p9), %s649_s29, 16, %s647_s4, %s217_s5  }
 0x121 PF: > { %s243_s26 = sand.u32 1, %s483_s6   ;;  %p708_p7 = scmp.ne.s32.totalorder %s703_s21, 0 }
 0x122   : > { %p709_p13 = scmp.ge.s32.totalorder %s503_s11, 2  ;;  %s244_s28 = scalar_lea.sflag [#allocation4], %s243_s26 }
 0x124   : > { %p337_p3 = pnand %p709_p13, %p708_p7 }
 0x126   : > { %478 = dma.done.wait (!%p337_p3), %s244_s28, 16  }
 0x127   : > { %480 = vsyncadd (!%p337_p3), %s244_s28, 4294967280  ;;  %s17_s11 = sadd.s32 1, %s503_s11   ;;  %s710_s6 = smov %s487_s7 }
 0x128   : > { %p14_p6 = scmp.ge.s32.totalorder %s17_s11, 4   ;;  %s711_s7 = smov %s491_s8 }
 0x129   : > { %s712_s8 = smov %s574_s20  ;;  %s713_s9 = smov %s499_s10 }
 0x12a   : > { %s714_s10 = smov %s716_s14  ;;  %16 = sbr.rel (!%p14_p6) target bundleno = 6 (0x6), region = 73 }
 0x131   :  { %248 = vsyncpa [#allocation3], 1 }
 0x132   :  { %250 = vsyncpa [#allocation3 + $0x1], 1 }
 0x133   :  { %251 = vsyncpa [#allocation4], 1 }
 0x134   :  { %253 = vsyncpa [#allocation4 + $0x1], 1 }

</bundles_post_ra>
